<compile_context>
chip_gen: v7x
topology: tpu7x:2x2x1
jax: 0.10.0
libtpu: 0.0.40
codegen_flags: <defaults>
</compile_context>

<pallas_src>
import functools

import jax
import jax.numpy as jnp
from jax import lax
from jax.experimental import pallas as pl
from jax.experimental.pallas import tpu as pltpu

_LANE = 128
_SUBLANE = 8
_NEG_BIG = -9e15  # same mask constant as the PyTorch module


def _round_up(n, m):
    return ((n + m - 1) // m) * m


def _gat_fused_kernel(x_ref, adj_ref, w1_ref, a11_ref, a12_ref,
                      w2_ref, a21_ref, a22_ref, out_ref,
                      *, alpha, n_classes):
    """Two GraphAttention layers (concat=False) + ELU + log_softmax, fused."""
    x = x_ref[...]                                     # [Np, Fp]
    adj_mask = adj_ref[...] > 0.0                      # [Np, Np]

    def attention_layer(feat, w, a1_row, a2_row):
        # h = feat @ W                                              (MXU)
        h = jnp.dot(feat, w, preferred_element_type=jnp.float32)   # [Np, Fo]
        # f1[i] = sum_k h[i,k]*a1[k]  -> [Np,1]        (VPU mul + XLU reduce)
        f1 = jnp.sum(h * a1_row, axis=-1, keepdims=True)
        # f2^T[j] = sum_k a2[k]*h[j,k] -> [1,Np]; a single mat-vec yields the
        # row term in its natural lane-major layout (no cross-lane relayout).
        f2t = lax.dot_general(a2_row, h, (((1,), (1,)), ((), ())),
                              preferred_element_type=jnp.float32)
        e = f1 + f2t                                    # [Np, Np]
        # LeakyReLU + adjacency mask fused into one select.
        att = jnp.where(adj_mask, jnp.where(e > 0, e, alpha * e), _NEG_BIG)
        # row softmax (masked / padded columns underflow to exactly 0)
        m = jnp.max(att, axis=-1, keepdims=True)
        p = jnp.exp(att - m)
        att = p / jnp.sum(p, axis=-1, keepdims=True)
        # TODO(synk): F.dropout on inputs / attention weights skipped
        # (inference mode, training=False -> identity).
        return jnp.dot(att, h, preferred_element_type=jnp.float32)

    # Layer-1 output stays on-chip (VMEM / vregs); no HBM writeback/reload.
    h1 = attention_layer(x, w1_ref[...], a11_ref[...], a12_ref[...])
    hp = attention_layer(h1, w2_ref[...], a21_ref[...], a22_ref[...])

    # ELU; clamp the exp argument so the unused positive branch never overflows.
    elu = jnp.where(hp > 0, hp, jnp.exp(jnp.minimum(hp, 0.0)) - 1.0)

    # log_softmax over the real class columns only (output is lane-padded).
    col = lax.broadcasted_iota(jnp.int32, elu.shape, 1)
    valid = col < n_classes
    z = jnp.where(valid, elu, -1e30)
    mx = jnp.max(z, axis=-1, keepdims=True)
    lse = jnp.log(jnp.sum(jnp.exp(z - mx), axis=-1, keepdims=True)) + mx
    out_ref[...] = jnp.where(valid, elu - lse, 0.0).astype(out_ref.dtype)


@functools.partial(jax.jit, static_argnames=("alpha",))
def gat_forward(x, adj, params, *, alpha):
    """Full GAT forward (inference mode) in one fused Pallas kernel."""
    w1, a11, a12, w2, a21, a22 = params
    n, nfeat = x.shape
    nhid = w1.shape[1]
    nclass = w2.shape[1]

    # Pad rows to the f32 sublane tile and all feature axes to full 128 lanes
    # so loads and (especially) the output store are lane-dense.
    np_ = _round_up(n, _SUBLANE)
    fp_ = _round_up(nfeat, _LANE)
    hp_ = _round_up(nhid, _LANE)
    cp_ = _round_up(nclass, _LANE)

    f32 = jnp.float32
    xp = jnp.zeros((np_, fp_), f32).at[:n, :nfeat].set(x.astype(f32))
    adjp = jnp.zeros((np_, np_), f32).at[:n, :n].set(adj.astype(f32))
    w1p = jnp.zeros((fp_, hp_), f32).at[:nfeat, :nhid].set(w1.astype(f32))
    a11p = jnp.zeros((1, hp_), f32).at[:, :nhid].set(a11.astype(f32).T)
    a12p = jnp.zeros((1, hp_), f32).at[:, :nhid].set(a12.astype(f32).T)
    w2p = jnp.zeros((hp_, cp_), f32).at[:nhid, :nclass].set(w2.astype(f32))
    a21p = jnp.zeros((1, cp_), f32).at[:, :nclass].set(a21.astype(f32).T)
    a22p = jnp.zeros((1, cp_), f32).at[:, :nclass].set(a22.astype(f32).T)

    kernel = functools.partial(_gat_fused_kernel, alpha=alpha,
                               n_classes=nclass)

    def full(shape):
        return pl.BlockSpec(shape, lambda i: (0, 0))

    out_p = pl.pallas_call(
        kernel,
        out_shape=jax.ShapeDtypeStruct((np_, cp_), f32),
        grid=(1,),
        in_specs=[full(xp.shape), full(adjp.shape), full(w1p.shape),
                  full(a11p.shape), full(a12p.shape), full(w2p.shape),
                  full(a21p.shape), full(a22p.shape)],
        out_specs=full((np_, cp_)),
        compiler_params=pltpu.CompilerParams(
            dimension_semantics=("arbitrary",)),
    )(xp, adjp, w1p, a11p, a12p, w2p, a21p, a22p)

    return out_p[:n, :nclass]


def _gat_reference(x, adj, params, *, alpha):
    """Pure-JAX reference mirroring the PyTorch forward (dropout = identity)."""
    w1, a11, a12, w2, a21, a22 = params
    hi = jax.lax.Precision.HIGHEST
    hp = x
    for w, a1, a2 in ((w1, a11, a12), (w2, a21, a22)):
        h = jnp.dot(hp, w, precision=hi)
        e = jnp.dot(h, a1, precision=hi) + jnp.dot(h, a2, precision=hi).T
        e = jnp.where(e > 0, e, alpha * e)
        att = jax.nn.softmax(jnp.where(adj > 0, e, _NEG_BIG), axis=-1)
        hp = jnp.dot(att, h, precision=hi)
    hp = jnp.where(hp > 0, hp, jnp.exp(jnp.minimum(hp, 0.0)) - 1.0)
    return jax.nn.log_softmax(hp, axis=-1)


def xavier_normal(key, shape, gain):
    fan_in, fan_out = shape
    std = gain * (2.0 / (fan_in + fan_out)) ** 0.5
    return std * jax.random.normal(key, shape, dtype=jnp.float32)


if __name__ == "__main__":
    key = jax.random.PRNGKey(0)
    ks = jax.random.split(key, 8)

    # Small shapes consistent with the module (nheads=1 so that
    # out_att.in_features == nhid * nheads matches the hidden output).
    N, nfeat, nhid, nclass, nheads = 16, 32, 32, 8, 1
    alpha = 0.2          # LeakyReLU negative slope
    gain = 2.0 ** 0.5    # np.sqrt(2.0) as in the PyTorch init

    x = jax.random.normal(ks[0], (N, nfeat), dtype=jnp.float32)
    adj = (jax.random.uniform(ks[1], (N, N)) > 0.5).astype(jnp.float32)
    # self-loops: guarantees every row has at least one edge (softmax invariant)
    adj = jnp.maximum(adj, jnp.eye(N, dtype=jnp.float32))

    W1 = xavier_normal(ks[2], (nfeat, nhid), gain)
    a11 = xavier_normal(ks[3], (nhid, 1), gain)
    a12 = xavier_normal(ks[4], (nhid, 1), gain)
    W2 = xavier_normal(ks[5], (nhid * nheads, nclass), gain)
    a21 = xavier_normal(ks[6], (nclass, 1), gain)
    a22 = xavier_normal(ks[7], (nclass, 1), gain)
    params = (W1, a11, a12, W2, a21, a22)

    out = gat_forward(x, adj, params, alpha=alpha)
    out = jax.block_until_ready(out)

    assert out.shape == (N, nclass)
    assert bool(jnp.all(jnp.isfinite(out)))
    # rows of log_softmax must exp-sum to 1
    assert bool(jnp.allclose(jnp.sum(jnp.exp(out), axis=1), 1.0, atol=1e-4))
    # match the pure-JAX reference
    ref = _gat_reference(x, adj, params, alpha=alpha)
    assert bool(jnp.allclose(out, ref, atol=1e-2, rtol=1e-2))

    print("KERNEL_OK")
</pallas_src>

<mosaic_0001>
module attributes {stable_mosaic.version = 11 : i64} {
  func.func @_gat_fused_kernel(%arg0: i32, %arg1: memref<16x128xf32, #tpu.memory_space<vmem>>, %arg2: memref<16x16xf32, #tpu.memory_space<vmem>>, %arg3: memref<128x128xf32, #tpu.memory_space<vmem>>, %arg4: memref<1x128xf32, #tpu.memory_space<vmem>>, %arg5: memref<1x128xf32, #tpu.memory_space<vmem>>, %arg6: memref<128x128xf32, #tpu.memory_space<vmem>>, %arg7: memref<1x128xf32, #tpu.memory_space<vmem>>, %arg8: memref<1x128xf32, #tpu.memory_space<vmem>>, %arg9: memref<16x128xf32, #tpu.memory_space<vmem>>) attributes {dimension_semantics = [#tpu.dimension_semantics<arbitrary>], iteration_bounds = array<i64: 1>, scalar_prefetch = 0 : i64, scratch_operands = 0 : i64, tpu.core_type = #tpu.core_type<tc>, window_params = [{pipeline_mode = #tpu.pipeline_mode<synchronous>, transform_indices = @transform_0, window_bounds = array<i64: 16, 128>}, {pipeline_mode = #tpu.pipeline_mode<synchronous>, transform_indices = @transform_1, window_bounds = array<i64: 16, 16>}, {pipeline_mode = #tpu.pipeline_mode<synchronous>, transform_indices = @transform_2, window_bounds = array<i64: 128, 128>}, {pipeline_mode = #tpu.pipeline_mode<synchronous>, transform_indices = @transform_3, window_bounds = array<i64: 1, 128>}, {pipeline_mode = #tpu.pipeline_mode<synchronous>, transform_indices = @transform_4, window_bounds = array<i64: 1, 128>}, {pipeline_mode = #tpu.pipeline_mode<synchronous>, transform_indices = @transform_5, window_bounds = array<i64: 128, 128>}, {pipeline_mode = #tpu.pipeline_mode<synchronous>, transform_indices = @transform_6, window_bounds = array<i64: 1, 128>}, {pipeline_mode = #tpu.pipeline_mode<synchronous>, transform_indices = @transform_7, window_bounds = array<i64: 1, 128>}, {pipeline_mode = #tpu.pipeline_mode<synchronous>, transform_indices = @transform_8, window_bounds = array<i64: 16, 128>}]} {
    %c0 = arith.constant 0 : index
    %c0_0 = arith.constant 0 : index
    %0 = vector.load %arg1[%c0, %c0_0] : memref<16x128xf32, #tpu.memory_space<vmem>>, vector<16x128xf32>
    %c0_1 = arith.constant 0 : index
    %c0_2 = arith.constant 0 : index
    %1 = vector.load %arg2[%c0_1, %c0_2] : memref<16x16xf32, #tpu.memory_space<vmem>>, vector<16x16xf32>
    %cst = arith.constant 0.000000e+00 : f32
    %2 = vector.broadcast %cst : f32 to vector<16x16xf32>
    %3 = arith.cmpf ogt, %1, %2 : vector<16x16xf32>
    %c0_3 = arith.constant 0 : index
    %c0_4 = arith.constant 0 : index
    %4 = vector.load %arg3[%c0_3, %c0_4] : memref<128x128xf32, #tpu.memory_space<vmem>>, vector<128x128xf32>
    %c0_5 = arith.constant 0 : index
    %c0_6 = arith.constant 0 : index
    %5 = vector.load %arg4[%c0_5, %c0_6] : memref<1x128xf32, #tpu.memory_space<vmem>>, vector<1x128xf32>
    %c0_7 = arith.constant 0 : index
    %c0_8 = arith.constant 0 : index
    %6 = vector.load %arg5[%c0_7, %c0_8] : memref<1x128xf32, #tpu.memory_space<vmem>>, vector<1x128xf32>
    %cst_9 = arith.constant dense<0.000000e+00> : vector<16x128xf32>
    %7 = tpu.matmul %0, %4, %cst_9 {dimension_numbers = #tpu.dot_dimension_numbers<[1], [0], [0], [1], [0, 0, 1, 1], [], []>} : vector<16x128xf32>, vector<128x128xf32>, vector<16x128xf32> -> vector<16x128xf32>
    %8 = vector.broadcast %5 : vector<1x128xf32> to vector<16x128xf32>
    %9 = arith.mulf %7, %8 : vector<16x128xf32>
    %cst_10 = arith.constant dense<0.000000e+00> : vector<16xf32>
    %10 = vector.multi_reduction <add>, %9, %cst_10 [1] : vector<16x128xf32> to vector<16xf32>
    %11 = vector.shape_cast %10 : vector<16xf32> to vector<16x1xf32>
    %cst_11 = arith.constant dense<0.000000e+00> : vector<1x16xf32>
    %12 = tpu.matmul %6, %7, %cst_11 {dimension_numbers = #tpu.dot_dimension_numbers<[1], [1], [0], [0], [0, 0, 1, 0], [], []>} : vector<1x128xf32>, vector<16x128xf32>, vector<1x16xf32> -> vector<1x16xf32>
    %13 = vector.broadcast %11 : vector<16x1xf32> to vector<16x16xf32>
    %14 = vector.broadcast %12 : vector<1x16xf32> to vector<16x16xf32>
    %15 = arith.addf %13, %14 : vector<16x16xf32>
    %cst_12 = arith.constant 0.000000e+00 : f32
    %16 = vector.broadcast %cst_12 : f32 to vector<16x16xf32>
    %17 = arith.cmpf ogt, %15, %16 : vector<16x16xf32>
    %cst_13 = arith.constant 2.000000e-01 : f32
    %18 = vector.broadcast %cst_13 : f32 to vector<16x16xf32>
    %19 = arith.mulf %18, %15 : vector<16x16xf32>
    %20 = arith.select %17, %15, %19 : vector<16x16xi1>, vector<16x16xf32>
    %cst_14 = arith.constant -9.000000e+15 : f32
    %21 = vector.broadcast %cst_14 : f32 to vector<16x16xf32>
    %22 = arith.select %3, %20, %21 : vector<16x16xi1>, vector<16x16xf32>
    %cst_15 = arith.constant dense<0xFF800000> : vector<16xf32>
    %23 = vector.multi_reduction <maximumf>, %22, %cst_15 [1] : vector<16x16xf32> to vector<16xf32>
    %24 = vector.shape_cast %23 : vector<16xf32> to vector<16x1xf32>
    %25 = vector.broadcast %24 : vector<16x1xf32> to vector<16x16xf32>
    %26 = arith.subf %22, %25 : vector<16x16xf32>
    %27 = math.exp %26 : vector<16x16xf32>
    %cst_16 = arith.constant dense<0.000000e+00> : vector<16xf32>
    %28 = vector.multi_reduction <add>, %27, %cst_16 [1] : vector<16x16xf32> to vector<16xf32>
    %29 = vector.shape_cast %28 : vector<16xf32> to vector<16x1xf32>
    %30 = vector.broadcast %29 : vector<16x1xf32> to vector<16x16xf32>
    %31 = arith.divf %27, %30 : vector<16x16xf32>
    %cst_17 = arith.constant dense<0.000000e+00> : vector<16x128xf32>
    %32 = tpu.matmul %31, %7, %cst_17 {dimension_numbers = #tpu.dot_dimension_numbers<[1], [0], [0], [1], [0, 0, 1, 1], [], []>} : vector<16x16xf32>, vector<16x128xf32>, vector<16x128xf32> -> vector<16x128xf32>
    %c0_18 = arith.constant 0 : index
    %c0_19 = arith.constant 0 : index
    %33 = vector.load %arg6[%c0_18, %c0_19] : memref<128x128xf32, #tpu.memory_space<vmem>>, vector<128x128xf32>
    %c0_20 = arith.constant 0 : index
    %c0_21 = arith.constant 0 : index
    %34 = vector.load %arg7[%c0_20, %c0_21] : memref<1x128xf32, #tpu.memory_space<vmem>>, vector<1x128xf32>
    %c0_22 = arith.constant 0 : index
    %c0_23 = arith.constant 0 : index
    %35 = vector.load %arg8[%c0_22, %c0_23] : memref<1x128xf32, #tpu.memory_space<vmem>>, vector<1x128xf32>
    %cst_24 = arith.constant dense<0.000000e+00> : vector<16x128xf32>
    %36 = tpu.matmul %32, %33, %cst_24 {dimension_numbers = #tpu.dot_dimension_numbers<[1], [0], [0], [1], [0, 0, 1, 1], [], []>} : vector<16x128xf32>, vector<128x128xf32>, vector<16x128xf32> -> vector<16x128xf32>
    %37 = vector.broadcast %34 : vector<1x128xf32> to vector<16x128xf32>
    %38 = arith.mulf %36, %37 : vector<16x128xf32>
    %cst_25 = arith.constant dense<0.000000e+00> : vector<16xf32>
    %39 = vector.multi_reduction <add>, %38, %cst_25 [1] : vector<16x128xf32> to vector<16xf32>
    %40 = vector.shape_cast %39 : vector<16xf32> to vector<16x1xf32>
    %cst_26 = arith.constant dense<0.000000e+00> : vector<1x16xf32>
    %41 = tpu.matmul %35, %36, %cst_26 {dimension_numbers = #tpu.dot_dimension_numbers<[1], [1], [0], [0], [0, 0, 1, 0], [], []>} : vector<1x128xf32>, vector<16x128xf32>, vector<1x16xf32> -> vector<1x16xf32>
    %42 = vector.broadcast %40 : vector<16x1xf32> to vector<16x16xf32>
    %43 = vector.broadcast %41 : vector<1x16xf32> to vector<16x16xf32>
    %44 = arith.addf %42, %43 : vector<16x16xf32>
    %cst_27 = arith.constant 0.000000e+00 : f32
    %45 = vector.broadcast %cst_27 : f32 to vector<16x16xf32>
    %46 = arith.cmpf ogt, %44, %45 : vector<16x16xf32>
    %cst_28 = arith.constant 2.000000e-01 : f32
    %47 = vector.broadcast %cst_28 : f32 to vector<16x16xf32>
    %48 = arith.mulf %47, %44 : vector<16x16xf32>
    %49 = arith.select %46, %44, %48 : vector<16x16xi1>, vector<16x16xf32>
    %cst_29 = arith.constant -9.000000e+15 : f32
    %50 = vector.broadcast %cst_29 : f32 to vector<16x16xf32>
    %51 = arith.select %3, %49, %50 : vector<16x16xi1>, vector<16x16xf32>
    %cst_30 = arith.constant dense<0xFF800000> : vector<16xf32>
    %52 = vector.multi_reduction <maximumf>, %51, %cst_30 [1] : vector<16x16xf32> to vector<16xf32>
    %53 = vector.shape_cast %52 : vector<16xf32> to vector<16x1xf32>
    %54 = vector.broadcast %53 : vector<16x1xf32> to vector<16x16xf32>
    %55 = arith.subf %51, %54 : vector<16x16xf32>
    %56 = math.exp %55 : vector<16x16xf32>
    %cst_31 = arith.constant dense<0.000000e+00> : vector<16xf32>
    %57 = vector.multi_reduction <add>, %56, %cst_31 [1] : vector<16x16xf32> to vector<16xf32>
    %58 = vector.shape_cast %57 : vector<16xf32> to vector<16x1xf32>
    %59 = vector.broadcast %58 : vector<16x1xf32> to vector<16x16xf32>
    %60 = arith.divf %56, %59 : vector<16x16xf32>
    %cst_32 = arith.constant dense<0.000000e+00> : vector<16x128xf32>
    %61 = tpu.matmul %60, %36, %cst_32 {dimension_numbers = #tpu.dot_dimension_numbers<[1], [0], [0], [1], [0, 0, 1, 1], [], []>} : vector<16x16xf32>, vector<16x128xf32>, vector<16x128xf32> -> vector<16x128xf32>
    %cst_33 = arith.constant 0.000000e+00 : f32
    %62 = vector.broadcast %cst_33 : f32 to vector<16x128xf32>
    %63 = arith.cmpf ogt, %61, %62 : vector<16x128xf32>
    %cst_34 = arith.constant 0.000000e+00 : f32
    %64 = vector.broadcast %cst_34 : f32 to vector<16x128xf32>
    %65 = arith.minimumf %61, %64 : vector<16x128xf32>
    %66 = math.exp %65 : vector<16x128xf32>
    %cst_35 = arith.constant 1.000000e+00 : f32
    %67 = vector.broadcast %cst_35 : f32 to vector<16x128xf32>
    %68 = arith.subf %66, %67 : vector<16x128xf32>
    %69 = arith.select %63, %61, %68 : vector<16x128xi1>, vector<16x128xf32>
    %70 = tpu.iota {dimensions = array<i32: 1>} : vector<16x128xi32>
    %c8_i32 = arith.constant 8 : i32
    %71 = vector.broadcast %c8_i32 : i32 to vector<16x128xi32>
    %72 = arith.cmpi slt, %70, %71 : vector<16x128xi32>
    %cst_36 = arith.constant -1.000000e+30 : f32
    %73 = vector.broadcast %cst_36 : f32 to vector<16x128xf32>
    %74 = arith.select %72, %69, %73 : vector<16x128xi1>, vector<16x128xf32>
    %cst_37 = arith.constant dense<0xFF800000> : vector<16xf32>
    %75 = vector.multi_reduction <maximumf>, %74, %cst_37 [1] : vector<16x128xf32> to vector<16xf32>
    %76 = vector.shape_cast %75 : vector<16xf32> to vector<16x1xf32>
    %77 = vector.broadcast %76 : vector<16x1xf32> to vector<16x128xf32>
    %78 = arith.subf %74, %77 : vector<16x128xf32>
    %79 = math.exp %78 : vector<16x128xf32>
    %cst_38 = arith.constant dense<0.000000e+00> : vector<16xf32>
    %80 = vector.multi_reduction <add>, %79, %cst_38 [1] : vector<16x128xf32> to vector<16xf32>
    %81 = vector.shape_cast %80 : vector<16xf32> to vector<16x1xf32>
    %82 = math.log %81 : vector<16x1xf32>
    %83 = arith.addf %82, %76 : vector<16x1xf32>
    %84 = vector.broadcast %83 : vector<16x1xf32> to vector<16x128xf32>
    %85 = arith.subf %69, %84 : vector<16x128xf32>
    %cst_39 = arith.constant 0.000000e+00 : f32
    %86 = vector.broadcast %cst_39 : f32 to vector<16x128xf32>
    %87 = arith.select %72, %85, %86 : vector<16x128xi1>, vector<16x128xf32>
    %c0_40 = arith.constant 0 : index
    %c0_41 = arith.constant 0 : index
    %88 = vector.load %arg9[%c0_40, %c0_41] : memref<16x128xf32, #tpu.memory_space<vmem>>, vector<16x128xf32>
    tpu.vector_store %arg9[%c0_40, %c0_41], %87 {strides = array<i32>} : memref<16x128xf32, #tpu.memory_space<vmem>>, vector<16x128xf32>,
    return
  }
  func.func @transform_0(%arg0: i32) -> (i32, i32) {
    %c0_i32 = arith.constant 0 : i32
    %c0_i32_0 = arith.constant 0 : i32
    %c0_i32_1 = arith.constant 0 : i32
    return %c0_i32, %c0_i32_0 : i32, i32
  }
  func.func @transform_1(%arg0: i32) -> (i32, i32) {
    %c0_i32 = arith.constant 0 : i32
    %c0_i32_0 = arith.constant 0 : i32
    %c0_i32_1 = arith.constant 0 : i32
    return %c0_i32, %c0_i32_0 : i32, i32
  }
  func.func @transform_2(%arg0: i32) -> (i32, i32) {
    %c0_i32 = arith.constant 0 : i32
    %c0_i32_0 = arith.constant 0 : i32
    %c0_i32_1 = arith.constant 0 : i32
    return %c0_i32, %c0_i32_0 : i32, i32
  }
  func.func @transform_3(%arg0: i32) -> (i32, i32) {
    %c0_i32 = arith.constant 0 : i32
    %c0_i32_0 = arith.constant 0 : i32
    %c0_i32_1 = arith.constant 0 : i32
    return %c0_i32, %c0_i32_0 : i32, i32
  }
  func.func @transform_4(%arg0: i32) -> (i32, i32) {
    %c0_i32 = arith.constant 0 : i32
    %c0_i32_0 = arith.constant 0 : i32
    %c0_i32_1 = arith.constant 0 : i32
    return %c0_i32, %c0_i32_0 : i32, i32
  }
  func.func @transform_5(%arg0: i32) -> (i32, i32) {
    %c0_i32 = arith.constant 0 : i32
    %c0_i32_0 = arith.constant 0 : i32
    %c0_i32_1 = arith.constant 0 : i32
    return %c0_i32, %c0_i32_0 : i32, i32
  }
  func.func @transform_6(%arg0: i32) -> (i32, i32) {
    %c0_i32 = arith.constant 0 : i32
    %c0_i32_0 = arith.constant 0 : i32
    %c0_i32_1 = arith.constant 0 : i32
    return %c0_i32, %c0_i32_0 : i32, i32
  }
  func.func @transform_7(%arg0: i32) -> (i32, i32) {
    %c0_i32 = arith.constant 0 : i32
    %c0_i32_0 = arith.constant 0 : i32
    %c0_i32_1 = arith.constant 0 : i32
    return %c0_i32, %c0_i32_0 : i32, i32
  }
  func.func @transform_8(%arg0: i32) -> (i32, i32) {
    %c0_i32 = arith.constant 0 : i32
    %c0_i32_0 = arith.constant 0 : i32
    %c0_i32_1 = arith.constant 0 : i32
    return %c0_i32, %c0_i32_0 : i32, i32
  }
}

</mosaic_0001>

<bundles_post_ra>
// kernel: gat_forward.1
= control target key start
LH: loop header
LB: loop body
LE: loop exit
PB: predicated region body
PF: predicated region fallthrough
CT: control target
= control target key end

     0   :  { %v932_v26 = vmov 0.0|0.0   ;;  %vm933_vm0 = vmmov 0   ;;  %v934_v27 = vmov 0.0   ;;  %v210_v35 = vlaneseq  ;;  %s1145_s2 = inlined_call_operand.vmem [shape: f32[128,128], index: 2, kind: input, shape index: {}]   ;;  %s1146_s0 = inlined_call_operand.vmem [shape: f32[16,128], index: 0, kind: input, shape index: {}]   ;;  %s1147_s3 = inlined_call_operand.vmem [shape: f32[1,128], index: 3, kind: input, shape index: {}]   ;;  %s1148_s4 = inlined_call_operand.vmem [shape: f32[1,128], index: 4, kind: input, shape index: {}]   ;;  %s1149_s1 = inlined_call_operand.vmem [shape: f32[16,16], index: 1, kind: input, shape index: {}]   ;;  %s1150_s5 = inlined_call_operand.vmem [shape: f32[128,128], index: 5, kind: input, shape index: {}]   ;;  %s1151_s6 = inlined_call_operand.vmem [shape: f32[1,128], index: 6, kind: input, shape index: {}]   ;;  %s1152_s7 = inlined_call_operand.vmem [shape: f32[1,128], index: 7, kind: input, shape index: {}]   ;;  %s1153_s8 = inlined_call_operand.vmem [shape: f32[16,128], index: 8, kind: output, shape index: {}]  }
   0x1   :  { %v35_v0 = vld [vmem:[%s1145_s2] sm:$0xff]  ;;  %v36_v1 = vld [vmem:[%s1145_s2 + $0x8] sm:$0xff]  ;;  %v37_v2 = vld [vmem:[%s1145_s2 + $0x10] sm:$0xff]  ;;  %855 = vmatprep.subr.bf16.mxu1 %v932_v26  ;;  %764 = vmatprep.mubr.msk.f32.mxu1 %vm933_vm0, %v934_v27  ;;  %vm224_vm4 = vcmask 130048  }
   0x2   :  { %v823_v3 = vpack.c.bf16 %v36_v1, %v35_v0  ;;  %v38_v4 = vld [vmem:[%s1145_s2 + $0x18] sm:$0xff]  ;;  %v39_v6 = vld [vmem:[%s1145_s2 + $0x20] sm:$0xff]  ;;  %v40_v7 = vld [vmem:[%s1145_s2 + $0x28] sm:$0xff]  ;;  %v1041_v36 = vshrl.u32 %v210_v35, 7 }
   0x3   :  { %v827_v5 = vpack.c.bf16 %v38_v4, %v37_v2  ;;  %v831_v8 = vpack.c.bf16 %v40_v7, %v39_v6  ;;  %v29_v9 = vld [vmem:[%s1146_s0] sm:$0xff]  ;;  %v41_v10 = vld [vmem:[%s1145_s2 + $0x30] sm:$0xff]  ;;  %v42_v11 = vld [vmem:[%s1145_s2 + $0x38] sm:$0xff] }
   0x4   :  { %824 = vmatprep.subr.bf16.mxu0 %v823_v3  ;;  %757 = vmatprep.mubr.f32.mxu0 %v29_v9  ;;  %v835_v12 = vpack.c.bf16 %v42_v11, %v41_v10  ;;  %v43_v13 = vld [vmem:[%s1145_s2 + $0x40] sm:$0xff]  ;;  %v44_v14 = vld [vmem:[%s1145_s2 + $0x48] sm:$0xff]  ;;  %v45_v16 = vld [vmem:[%s1145_s2 + $0x50] sm:$0xff]  ;;  %v212_v38 = vsub.s32 0, %v1041_v36 }
   0x5   :  { %826 = vmatpush3.bf16.msra.mxu0 %v823_v3  ;;  %v839_v15 = vpack.c.bf16 %v44_v14, %v43_v13  ;;  %v46_v17 = vld [vmem:[%s1145_s2 + $0x58] sm:$0xff]  ;;  %v47_v19 = vld [vmem:[%s1145_s2 + $0x60] sm:$0xff]  ;;  %v48_v20 = vld [vmem:[%s1145_s2 + $0x68] sm:$0xff] }
   0x6   :  { %828 = vmatprep.subr.bf16.mxu0 %v827_v5  ;;  %v843_v18 = vpack.c.bf16 %v46_v17, %v45_v16  ;;  %v847_v21 = vpack.c.bf16 %v48_v20, %v47_v19  ;;  %v49_v22 = vld [vmem:[%s1145_s2 + $0x70] sm:$0xff]  ;;  %v50_v23 = vld [vmem:[%s1145_s2 + $0x78] sm:$0xff]  ;;  %v30_v25 = vld [vmem:[%s1146_s0 + $0x8] sm:$0xff] }
   0x7   :  { %v851_v24 = vpack.c.bf16 %v50_v23, %v49_v22  ;;  %v667_v28 = vld [vmem:[%s1147_s3] ss:$0 sm:$0xff]  ;;  %v1055_v46 = vld [vmem:[%s1149_s1 + $0x8] sm:$0xff]  ;;  %v331_v9 = vld [vmem:[%s1150_s5 + $0x18] sm:$0xff] }
   0x8   :  { %v52_v34 = vld [vmem:[%s1148_s4] sm:$0x1]  ;;  %vm34_vm5 = vcmp.gt.f32.partialorder %v1055_v46, 0.0  ;;  %v329_v2 = vld [vmem:[%s1150_s5 + $0x8] sm:$0xff]  ;;  %v334_v16 = vld [vmem:[%s1150_s5 + $0x30] sm:$0xff] }
   0x9   :  { %830 = vmatpush3.bf16.msra.mxu0 %v827_v5  ;;  %v1049_v42 = vld [vmem:[%s1149_s1] sm:$0xff]  ;;  %v333_v14 = vld [vmem:[%s1150_s5 + $0x28] sm:$0xff]  ;;  %v335_v17 = vld [vmem:[%s1150_s5 + $0x38] sm:$0xff] }
   0xa   :  { %832 = vmatprep.subr.bf16.mxu0 %v831_v8  ;;  %vm33_vm1 = vcmp.gt.f32.partialorder %v1049_v42, 0.0  ;;  %v328_v1 = vld [vmem:[%s1150_s5] sm:$0xff]  ;;  %v337_v20 = vld [vmem:[%s1150_s5 + $0x48] sm:$0xff]  ;;  %v338_v22 = vld [vmem:[%s1150_s5 + $0x50] sm:$0xff] }
   0xb   :  { %v862_v3 = vpack.c.bf16 %v329_v2, %v328_v1  ;;  %v332_v13 = vld [vmem:[%s1150_s5 + $0x20] sm:$0xff]  ;;  %v339_v23 = vld [vmem:[%s1150_s5 + $0x58] sm:$0xff] }
   0xc   :  { %v336_v19 = vld [vmem:[%s1150_s5 + $0x40] sm:$0xff] }
   0xd   :  { %834 = vmatpush3.bf16.msra.mxu0 %v831_v8  ;;  %v330_v8 = vld [vmem:[%s1150_s5 + $0x10] sm:$0xff] }
   0xe   :  { %836 = vmatprep.subr.bf16.mxu0 %v835_v12 }
  0x11   :  { %838 = vmatpush3.bf16.msra.mxu0 %v835_v12  ;;  %v866_v12 = vpack.c.bf16 %v331_v9, %v330_v8 }
  0x12   :  { %840 = vmatprep.subr.bf16.mxu0 %v839_v15 }
  0x15   :  { %842 = vmatpush3.bf16.msra.mxu0 %v839_v15  ;;  %v870_v15 = vpack.c.bf16 %v333_v14, %v332_v13  ;;  %v633_v14 = vand.u32 127, %v210_v35 }
  0x16   :  { %844 = vmatprep.subr.bf16.mxu0 %v843_v18 }
  0x17   :  { %vm634_vm8 = vcmp.lt.s32.totalorder %v633_v14, 8 }
  0x19   :  { %846 = vmatpush3.bf16.msra.mxu0 %v843_v18  ;;  %v874_v18 = vpack.c.bf16 %v335_v17, %v334_v16 }
  0x1a   :  { %848 = vmatprep.subr.bf16.mxu0 %v847_v21 }
  0x1d   :  { %850 = vmatpush3.bf16.msra.mxu0 %v847_v21  ;;  %v878_v21 = vpack.c.bf16 %v337_v20, %v336_v19 }
  0x1e   :  { %852 = vmatprep.subr.bf16.mxu0 %v851_v24 }
  0x21   :  { %854 = vmatpush3.bf16.msra.mxu0 %v851_v24  ;;  %v882_v24 = vpack.c.bf16 %v339_v23, %v338_v22 }
  0x22   :  { %894 = vmatprep.subr.bf16.mxu0 %v932_v26  ;;  %v341_v26 = vld [vmem:[%s1150_s5 + $0x68] sm:$0xff] }
  0x24   :  { %758 = vmatmul.mubr.f32.vlgmr.msra.gmra.mrb[0].mxu0 %v30_v25  ;;  %v340_v25 = vld [vmem:[%s1150_s5 + $0x60] sm:$0xff] }
  0x25   :  { %813 = vmatprep.mubr.msk.f32.mxu0 %vm933_vm0, %v934_v27  ;;  %v886_v27 = vpack.c.bf16 %v341_v26, %v340_v25 }
  0xf7   :  { %v759_v29 = vpop.f32.mrb[0].mxu0 }
  0xf8   :  { %v119_v30 = vpop.f32.mrb[1].mxu0  ;;  %v135_v33 = vmul.f32 %v759_v29, %v667_v28 }
  0xf9   :  { %v856_v31 = vpack.c.bf16 %v759_v29, %v119_v30  ;;  %v134_v32 = vmul.f32 %v667_v28, %v119_v30  ;;  %v342_v28 = vld [vmem:[%s1150_s5 + $0x70] sm:$0xff]  ;;  %v343_v29 = vld [vmem:[%s1150_s5 + $0x78] sm:$0xff] }
  0xfa   :  { %v890_v30 = vpack.c.bf16 %v343_v29, %v342_v28 }
  0xfb   :  { %857 = vmatpush3.bf16.xpose.msra.mxu1 %v856_v31  ;;  %136 = vadd.xlane.f32.xlu0 %v134_v32 }
  0xfc   :  { %859 = vmatprep.subr.bf16.mxu1 %v856_v31 }
  0xff   :  { %138 = vadd.xlane.f32.xlu0 %v135_v33  ;;  %v670_v33 = vld [vmem:[%s1151_s6] ss:$0 sm:$0xff] }
 0x102   :  { %765 = vmatmul.mubr.f32.vlgmr.msra.gmra.mrb[0].mxu1 %v52_v34 }
 0x103   :  { %861 = vmatpush3.bf16.msra.mxu1 %v856_v31 }
 0x104   :  { %863 = vmatprep.subr.bf16.mxu1 %v862_v3 }
 0x188   :  { %v137_v37 = vpop.xlane.xlu0 %136 }
 0x18c   :  { %v139_v43 = vpop.xlane.xlu0 %138 }
 0x1d5   :  { %v206_v39 = vpop.f32.mrb[0].mxu1 }
 0x1d6   :  { %v213_v40 = vrot.slane %v206_v39, %v212_v38  ;;  %v766_v41 = vpop.f32.mrb[1].mxu1 }
 0x1d8   :  { %v214_v44 = vadd.f32 %v213_v40, %v137_v37  ;;  %v215_v45 = vadd.f32 %v213_v40, %v139_v43  ;;  %v345_v43 = vld [vmem:[%s1152_s7] sm:$0x1] }
 0x1da   :  { %vm216_vm2 = vcmp.gt.f32.partialorder %v214_v44, 0.0  ;;  %v218_v47 = vmul.f32 0.2, %v214_v44  ;;  %vm217_vm3 = vcmp.gt.f32.partialorder %v215_v45, 0.0  ;;  %v219_v48 = vmul.f32 0.2, %v215_v45 }
 0x1dc   :  { %v220_v49 = vsel %vm216_vm2, %v214_v44, %v218_v47  ;;  %v221_v50 = vsel %vm217_vm3, %v215_v45, %v219_v48 }
 0x1dd   :  { %v222_v51 = vsel %vm33_vm1, %v220_v49, -9e+15  ;;  %v223_v53 = vsel %vm34_vm5, %v221_v50, -9e+15 }
 0x1de   :  { %v225_v52 = vsel %vm224_vm4, %v222_v51, -inf  ;;  %v228_v54 = vsel %vm224_vm4, %v223_v53, -inf }
 0x1df   :  { %226 = vmax.xlane.f32.xlu1 %v225_v52 }
 0x1e3   :  { %229 = vmax.xlane.f32.xlu1 %v228_v54 }
 0x26c   :  { %v227_v55 = vpop.xlane.xlu1 %226 }
 0x26d   :  { %v231_v56 = vsub.f32 %v222_v51, %v227_v55 }
 0x26f   :  { %v233_v57 = vmul.f32 1.442695, %v231_v56 }
 0x270   :  { %v230_v58 = vpop.xlane.xlu1 %229 }
 0x271   :  { %904 = vpow2.f32 %v233_v57  ;;  %v232_v59 = vsub.f32 %v223_v53, %v230_v58 }
 0x273   :  { %v235_v60 = vmul.f32 1.442695, %v232_v59 }
 0x275   :  { %906 = vpow2.f32 %v235_v60 }
 0x27b   :  { %v905_v61 = vpop.eup %904 }
 0x27c   :  { %v237_v62 = vsel %vm224_vm4, %v905_v61, 0.0 }
 0x27d   :  { %238 = vadd.xlane.f32.xlu0 %v237_v62 }
 0x27f   :  { %v907_v63 = vpop.eup %906 }
 0x280   :  { %v240_v0 = vsel %vm224_vm4, %v907_v63, 0.0 }
 0x281   :  { %241 = vadd.xlane.f32.xlu1 %v240_v0 }
 0x30a   :  { %v239_v4 = vpop.xlane.xlu0 %238 }
 0x30b   :  { %908 = vrcp.f32 %v239_v4 }
 0x30e   :  { %v242_v5 = vpop.xlane.xlu1 %241 }
 0x30f   :  { %910 = vrcp.f32 %v242_v5 }
 0x315   :  { %v909_v6 = vpop.eup %908 }
 0x316   :  { %v244_v7 = vmul.f32 %v909_v6, %v905_v61 }
 0x318   :  { %771 = vmatprep.mubr.msk.f32.mxu1 %vm224_vm4, %v244_v7 }
 0x319   :  { %v911_v10 = vpop.eup %910 }
 0x31a   :  { %v246_v11 = vmul.f32 %v911_v10, %v907_v63 }
 0x31c   :  { %772 = vmatmul.mubr.msk.f32.vlgmr.msra.gmra.mrb[2].mxu1 %vm224_vm4, %v246_v11 }
 0x31d   :  { %865 = vmatpush3.bf16.msra.mxu1 %v862_v3 }
 0x31e   :  { %867 = vmatprep.subr.bf16.mxu1 %v866_v12 }
 0x321   :  { %869 = vmatpush3.bf16.msra.mxu1 %v866_v12 }
 0x322   :  { %871 = vmatprep.subr.bf16.mxu1 %v870_v15 }
 0x325   :  { %873 = vmatpush3.bf16.msra.mxu1 %v870_v15 }
 0x326   :  { %875 = vmatprep.subr.bf16.mxu1 %v874_v18 }
 0x329   :  { %877 = vmatpush3.bf16.msra.mxu1 %v874_v18 }
 0x32a   :  { %879 = vmatprep.subr.bf16.mxu1 %v878_v21 }
 0x32d   :  { %881 = vmatpush3.bf16.msra.mxu1 %v878_v21 }
 0x32e   :  { %883 = vmatprep.subr.bf16.mxu1 %v882_v24 }
 0x331   :  { %885 = vmatpush3.bf16.msra.mxu1 %v882_v24 }
 0x332   :  { %887 = vmatprep.subr.bf16.mxu1 %v886_v27 }
 0x335   :  { %889 = vmatpush3.bf16.msra.mxu1 %v886_v27 }
 0x336   :  { %891 = vmatprep.subr.bf16.mxu1 %v890_v30 }
 0x339   :  { %893 = vmatpush3.bf16.msra.mxu1 %v890_v30 }
 0x3ef   :  { %v773_v31 = vpop.f32.mrb[2].mxu1 }
 0x3f0   :  { %v319_v32 = vpop.f32.mrb[3].mxu1 }
 0x3f1   :  { %806 = vmatprep.mubr.f32.mxu1 %v319_v32 }
 0x3f2   :  { %807 = vmatmul.mubr.f32.vlgmr.msra.gmra.mrb[4].mxu1 %v773_v31 }
 0x4c5   :  { %v808_v34 = vpop.f32.mrb[4].mxu1 }
 0x4c6   :  { %v412_v37 = vpop.f32.mrb[5].mxu1  ;;  %v428_v39 = vmul.f32 %v808_v34, %v670_v33 }
 0x4c7   :  { %v427_v40 = vmul.f32 %v670_v33, %v412_v37  ;;  %v895_v41 = vpack.c.bf16 %v808_v34, %v412_v37 }
 0x4c8   :  { %431 = vadd.xlane.f32.xlu1 %v428_v39 }
 0x4c9   :  { %896 = vmatpush3.bf16.xpose.msra.mxu0 %v895_v41  ;;  %429 = vadd.xlane.f32.xlu0 %v427_v40 }
 0x4ca   :  { %898 = vmatprep.subr.bf16.mxu0 %v895_v41 }
 0x4d0   :  { %814 = vmatmul.mubr.f32.vlgmr.msra.gmra.mrb[2].mxu0 %v345_v43 }
 0x4d1   :  { %900 = vmatpush3.bf16.msra.mxu0 %v895_v41 }
 0x555   :  { %v432_v48 = vpop.xlane.xlu1 %431 }
 0x556   :  { %v430_v49 = vpop.xlane.xlu0 %429 }
 0x5a3   :  { %v499_v44 = vpop.f32.mrb[2].mxu0 }
 0x5a4   :  { %v506_v45 = vrot.slane %v499_v44, %v212_v38  ;;  %v815_v47 = vpop.f32.mrb[3].mxu0 }
 0x5a6   :  { %v507_v50 = vadd.f32 %v506_v45, %v430_v49  ;;  %v508_v51 = vadd.f32 %v506_v45, %v432_v48 }
 0x5a8   :  { %vm510_vm6 = vcmp.gt.f32.partialorder %v508_v51, 0.0  ;;  %v512_v52 = vmul.f32 0.2, %v508_v51  ;;  %vm509_vm7 = vcmp.gt.f32.partialorder %v507_v50, 0.0  ;;  %v511_v53 = vmul.f32 0.2, %v507_v50 }
 0x5aa   :  { %v514_v54 = vsel %vm510_vm6, %v508_v51, %v512_v52  ;;  %v513_v55 = vsel %vm509_vm7, %v507_v50, %v511_v53 }
 0x5ab   :  { %v516_v56 = vsel %vm34_vm5, %v514_v54, -9e+15  ;;  %v515_v57 = vsel %vm33_vm1, %v513_v55, -9e+15 }
 0x5ac   :  { %v520_v36 = vsel %vm224_vm4, %v516_v56, -inf  ;;  %v517_v38 = vsel %vm224_vm4, %v515_v57, -inf }
 0x5ad   :  { %521 = vmax.xlane.f32.xlu1 %v520_v36  ;;  %518 = vmax.xlane.f32.xlu0 %v517_v38 }
 0x63a   :  { %v522_v58 = vpop.xlane.xlu1 %521  ;;  %v519_v59 = vpop.xlane.xlu0 %518 }
 0x63b   :  { %v524_v60 = vsub.f32 %v516_v56, %v522_v58  ;;  %v523_v61 = vsub.f32 %v515_v57, %v519_v59 }
 0x63d   :  { %v527_v62 = vmul.f32 1.442695, %v524_v60  ;;  %v525_v63 = vmul.f32 1.442695, %v523_v61 }
 0x63f   :  { %912 = vpow2.f32 %v527_v62 }
 0x640   :  { %914 = vpow2.f32 %v525_v63 }
 0x649   :  { %v913_v0 = vpop.eup %912 }
 0x64a   :  { %v915_v46 = vpop.eup %914  ;;  %v532_v1 = vsel %vm224_vm4, %v913_v0, 0.0 }
 0x64b   :  { %533 = vadd.xlane.f32.xlu1 %v532_v1  ;;  %v529_v42 = vsel %vm224_vm4, %v915_v46, 0.0 }
 0x64c   :  { %530 = vadd.xlane.f32.xlu0 %v529_v42 }
 0x6d8   :  { %v534_v2 = vpop.xlane.xlu1 %533 }
 0x6d9   :  { %916 = vrcp.f32 %v534_v2  ;;  %v531_v3 = vpop.xlane.xlu0 %530 }
 0x6da   :  { %918 = vrcp.f32 %v531_v3 }
 0x6e3   :  { %v917_v4 = vpop.eup %916 }
 0x6e4   :  { %v919_v5 = vpop.eup %918  ;;  %v538_v6 = vmul.f32 %v917_v4, %v913_v0 }
 0x6e5   :  { %v536_v7 = vmul.f32 %v919_v5, %v915_v46 }
 0x6e7   :  { %820 = vmatprep.mubr.msk.f32.mxu0 %vm224_vm4, %v536_v7 }
 0x6e8   :  { %821 = vmatmul.mubr.msk.f32.vlgmr.msra.gmra.mrb[4].mxu0 %vm224_vm4, %v538_v6 }
 0x7bb   :  { %v822_v8 = vpop.f32.mrb[4].mxu0 }
 0x7bc   :  { %v623_v9 = vmin.f32 %v822_v8, 0.0  ;;  %v611_v10 = vpop.f32.mrb[5].mxu0  ;;  %vm621_vm9 = vcmp.gt.f32.partialorder %v822_v8, 0.0 }
 0x7bd   :  { %v622_v11 = vmin.f32 %v611_v10, 0.0  ;;  %vm620_vm10 = vcmp.gt.f32.partialorder %v611_v10, 0.0 }
 0x7be   :  { %v626_v12 = vmul.f32 1.442695, %v623_v9 }
 0x7bf   :  { %v624_v13 = vmul.f32 1.442695, %v622_v11 }
 0x7c0   :  { %920 = vpow2.f32 %v626_v12 }
 0x7c1   :  { %922 = vpow2.f32 %v624_v13 }
 0x7ca   :  { %v921_v15 = vpop.eup %920 }
 0x7cb   :  { %v923_v16 = vpop.eup %922  ;;  %v674_v17 = vadd.f32 -1.0, %v921_v15 }
 0x7cc   :  { %v673_v18 = vadd.f32 -1.0, %v923_v16 }
 0x7cd   :  { %v631_v19 = vsel %vm621_vm9, %v822_v8, %v674_v17 }
 0x7ce   :  { %v636_v20 = vsel %vm634_vm8, %v631_v19, -1e+30  ;;  %v630_v21 = vsel %vm620_vm10, %v611_v10, %v673_v18 }
 0x7cf   :  { %639 = vmax.xlane.f32.xlu1 %v636_v20  ;;  %v635_v22 = vsel %vm634_vm8, %v630_v21, -1e+30 }
 0x7d0   :  { %637 = vmax.xlane.f32.xlu0 %v635_v22 }
 0x85c   :  { %v640_v23 = vpop.xlane.xlu1 %639 }
 0x85d   :  { %v642_v24 = vsub.f32 %v636_v20, %v640_v23  ;;  %v638_v25 = vpop.xlane.xlu0 %637 }
 0x85e   :  { %v641_v26 = vsub.f32 %v635_v22, %v638_v25 }
 0x85f   :  { %v645_v35 = vmul.f32 1.442695, %v642_v24 }
 0x860   :  { %v643_v27 = vmul.f32 1.442695, %v641_v26 }
 0x861   :  { %924 = vpow2.f32 %v645_v35 }
 0x862   :  { %926 = vpow2.f32 %v643_v27 }
 0x86b   :  { %v925_v28 = vpop.eup %924 }
 0x86c   :  { %v927_v29 = vpop.eup %926  ;;  %649 = vadd.xlane.f32.xlu1 %v925_v28 }
 0x86d   :  { %647 = vadd.xlane.f32.xlu0 %v927_v29 }
 0x8f9   :  { %v650_v30 = vpop.xlane.xlu1 %649 }
 0x8fa   :  { %928 = vlog2.f32 %v650_v30  ;;  %v648_v31 = vpop.xlane.xlu0 %647 }
 0x8fb   :  { %930 = vlog2.f32 %v648_v31 }
 0x904   :  { %v929_v32 = vpop.eup %928 }
 0x905   :  { %v931_v33 = vpop.eup %930  ;;  %v654_v34 = vmul.f32 0.6931472, %v929_v32 }
 0x906   :  { %v652_v37 = vmul.f32 0.6931472, %v931_v33 }
 0x907   :  { %v656_v39 = vadd.f32 %v654_v34, %v640_v23 }
 0x908   :  { %v655_v40 = vadd.f32 %v652_v37, %v638_v25 }
 0x909   :  { %v658_v41 = vsub.f32 %v631_v19, %v656_v39 }
 0x90a   :  { %v657_v43 = vsub.f32 %v630_v21, %v655_v40 }
 0x90b   :  { %v660_v44 = vsel %vm634_vm8, %v658_v41, 0.0 }
 0x90c   :  { %662 = vst [vmem:[%s1153_s8 + $0x8] sm:$0xff] %v660_v44  ;;  %v659_v45 = vsel %vm634_vm8, %v657_v43, 0.0 }
 0x90d   :  { %661 = vst [vmem:[%s1153_s8] sm:$0xff] %v659_v45 }

</bundles_post_ra>
